<compile_context>
chip_gen: v7x
topology: tpu7x:2x2x1
jax: 0.10.0
libtpu: 0.0.40
codegen_flags: <defaults>
</compile_context>

<pallas_src>
import jax
import jax.numpy as jnp
from jax import lax
from jax.experimental import pallas as pl
from jax.experimental.pallas import tpu as pltpu

GAMMA = 2.0            # folded into explicit squares below (gamma == 2)
ALPHA = 0.25
LANE = 128             # lane width of the flattened (rows, 128) layout
ACC_SUB = 8            # sublane height of each per-block partial-sum tile
CHUNK_ROWS = 256       # rows per in-kernel compute chunk (bounds live temps)
MAX_BLOCK_ROWS = 8192  # 8192*128*4B = 4 MiB per f32 stream per pipeline buffer


def _round_up(x, m):
    return (x + m - 1) // m * m


def focal_loss(predictions, targets):
    """Mean focal loss (gamma=2, alpha=0.25); predictions/targets same shape."""
    assert predictions.shape == targets.shape
    total = predictions.size

    # Native dtypes straight into the kernel: a wrapper-side cast/pad would be
    # an extra un-fusable HBM read+write pass on a memory-bound op.
    pred_flat = predictions.reshape(-1)
    tgt_flat = targets.reshape(-1)
    rem = (-total) % LANE
    if rem:
        # Rare ragged-lane case (< 128 elements); padded values are masked
        # out in-kernel, so the pad value is irrelevant.
        pred_flat = jnp.pad(pred_flat, (0, rem))
        tgt_flat = jnp.pad(tgt_flat, (0, rem))
    rows = (total + rem) // LANE

    pred2d = pred_flat.reshape(rows, LANE)   # bitcast reshape (lane-dense)
    tgt2d = tgt_flat.reshape(rows, LANE)

    # Chunk/block sizing: chunk_rows satisfies the sublane tile of both input
    # dtypes ((8,128) f32, (16,128) bf16, (32,128) int8/bool); block_rows is a
    # multiple of chunk_rows and capped at 8192 (16 MiB double-buffered with
    # two f32 streams).
    itemsizes = (jnp.dtype(predictions.dtype).itemsize,
                 jnp.dtype(targets.dtype).itemsize)
    align = max(ACC_SUB, *(32 // max(1, s) for s in itemsizes))
    chunk_rows = min(CHUNK_ROWS, _round_up(rows, align))
    block_rows = min(MAX_BLOCK_ROWS, _round_up(rows, chunk_rows))
    n_chunks = block_rows // chunk_rows
    num_blocks = pl.cdiv(rows, block_rows)
    # Ragged tail (partial last block and/or padded lanes) -> in-kernel mask.
    needs_mask = (rem != 0) or (rows % block_rows != 0)

    def kernel(pred_ref, tgt_ref, out_ref):
        def chunk(c, acc):
            start = pl.multiple_of(c * chunk_rows, chunk_rows)
            x = pred_ref[pl.ds(start, chunk_rows), :].astype(jnp.float32)
            t = tgt_ref[pl.ds(start, chunk_rows), :].astype(jnp.float32)

            is_pos = t == 1.0
            # One shared exp(-|x|) feeds both the sigmoid and the softplus.
            e = jnp.exp(-jnp.abs(x))
            # Approx reciprocal: single EUP vrcp instead of a full f32 divide.
            inv = pl.reciprocal(1.0 + e, approx=True)
            # z = -x for positives, x for negatives; sigmoid(z) = (1-p) or p.
            z = jnp.where(is_pos, -x, x)
            w = jnp.where(z >= 0.0, 1.0, e) * inv
            fw = jnp.where(is_pos, ALPHA, 1.0 - ALPHA) * (w * w)  # gamma == 2
            # Numerically stable BCE-with-logits (general form, exact match to
            # F.binary_cross_entropy_with_logits even for non-binary targets).
            bce = jnp.maximum(x, 0.0) - x * t + jnp.log1p(e)
            v = fw * bce

            if needs_mask:
                # Zero out elements past the true element count (garbage rows
                # of the partial last block / lane padding).
                base = (pl.program_id(0) * block_rows + start) * LANE
                r = lax.broadcasted_iota(jnp.int32, (chunk_rows, LANE), 0)
                col = lax.broadcasted_iota(jnp.int32, (chunk_rows, LANE), 1)
                flat = base + r * LANE + col       # int32: assumes < 2^31 elems
                v = jnp.where(flat < total, v, 0.0)

            # Keep the reduction vreg-shaped: (chunk, LANE) -> (8, LANE) via
            # pure VPU adds; no per-step scalar/XLU reduce.
            return acc + v.reshape(-1, ACC_SUB, LANE).sum(axis=0)

        acc0 = jnp.zeros((ACC_SUB, LANE), jnp.float32)
        out_ref[...] = lax.fori_loop(0, n_chunks, chunk, acc0)

    partials = pl.pallas_call(
        kernel,
        out_shape=jax.ShapeDtypeStruct((num_blocks * ACC_SUB, LANE), jnp.float32),
        grid_spec=pltpu.PrefetchScalarGridSpec(
            num_scalar_prefetch=0,
            grid=(num_blocks,),
            in_specs=[
                pl.BlockSpec((block_rows, LANE), lambda i: (i, 0)),
                pl.BlockSpec((block_rows, LANE), lambda i: (i, 0)),
            ],
            out_specs=pl.BlockSpec((ACC_SUB, LANE), lambda i: (i, 0)),
        ),
        compiler_params=pltpu.CompilerParams(
            # Independent per-block partial sums -> parallel grid axis
            # (engages both TensorCores on v7x; neutral on v5e/v6e).
            dimension_semantics=("parallel",),
            # 16 MiB double-buffered inputs at the max block: raise v5e's
            # 16 MiB scoped default; still well within v7x's 64 MiB physical.
            vmem_limit_bytes=32 * 1024 * 1024,
        ),
    )(pred2d, tgt2d)

    # Tiny finishing reduction + mean in f32 outside the kernel.
    return jnp.sum(partials) / jnp.float32(total)


def focal_loss_ref(predictions, targets):
    """Pure-JAX reference mirroring the PyTorch module."""
    x = predictions.astype(jnp.float32)
    t = targets.astype(jnp.float32)
    p = jax.nn.sigmoid(x)
    fw = jnp.where(t == 1.0, ALPHA * (1.0 - p) ** GAMMA, (1.0 - ALPHA) * p ** GAMMA)
    bce = jnp.maximum(x, 0.0) - x * t + jnp.log1p(jnp.exp(-jnp.abs(x)))
    return jnp.mean(fw * bce)


if __name__ == "__main__":
    key = jax.random.PRNGKey(0)
    k1, k2 = jax.random.split(key)

    # NCHW-like shape, small: batch=2, channels=4, spatial=16x16
    shape = (2, 4, 16, 16)
    predictions = jax.random.normal(k1, shape, dtype=jnp.float32)
    targets = (jax.random.uniform(k2, shape) > 0.7).astype(jnp.float32)

    loss = focal_loss(predictions, targets)
    jax.block_until_ready(loss)

    ref = focal_loss_ref(predictions, targets)
    # rtol loosened slightly vs. exact math to cover the approx EUP reciprocal.
    assert jnp.allclose(loss, ref, rtol=1e-3, atol=1e-6), (loss, ref)

    print("KERNEL_OK")
</pallas_src>

<mosaic_0001>
module attributes {stable_mosaic.version = 11 : i64} {
  func.func @kernel(%arg0: i32, %arg1: memref<16x128xf32, #tpu.memory_space<vmem>>, %arg2: memref<16x128xf32, #tpu.memory_space<vmem>>, %arg3: memref<8x128xf32, #tpu.memory_space<vmem>>) attributes {dimension_semantics = [#tpu.dimension_semantics<parallel>], iteration_bounds = array<i64: 1>, scalar_prefetch = 0 : i64, scratch_operands = 0 : i64, tpu.core_type = #tpu.core_type<tc>, window_params = [{transform_indices = @transform_0, window_bounds = array<i64: 16, 128>}, {transform_indices = @transform_1, window_bounds = array<i64: 16, 128>}, {transform_indices = @transform_2, window_bounds = array<i64: 8, 128>}]} {
    %cst = arith.constant 0.000000e+00 : f32
    %0 = vector.broadcast %cst : f32 to vector<8x128xf32>
    %c0_i32 = arith.constant 0 : i32
    %c16_i32 = arith.constant 16 : i32
    %1 = arith.muli %c0_i32, %c16_i32 : i32
    %2 = tpu.assume_multiple %1, 16 : i32
    %3 = arith.index_cast %2 : i32 to index
    %c0 = arith.constant 0 : index
    %4 = vector.load %arg1[%3, %c0] : memref<16x128xf32, #tpu.memory_space<vmem>>, vector<16x128xf32>
    %5 = arith.index_cast %2 : i32 to index
    %c0_0 = arith.constant 0 : index
    %6 = vector.load %arg2[%5, %c0_0] : memref<16x128xf32, #tpu.memory_space<vmem>>, vector<16x128xf32>
    %cst_1 = arith.constant 1.000000e+00 : f32
    %7 = vector.broadcast %cst_1 : f32 to vector<16x128xf32>
    %8 = arith.cmpf oeq, %6, %7 : vector<16x128xf32>
    %9 = math.absf %4 : vector<16x128xf32>
    %cst_2 = arith.constant 0.000000e+00 : f32
    %10 = vector.broadcast %cst_2 : f32 to vector<16x128xf32>
    %11 = arith.subf %10, %9 : vector<16x128xf32>
    %12 = math.exp %11 : vector<16x128xf32>
    %cst_3 = arith.constant 1.000000e+00 : f32
    %13 = vector.broadcast %cst_3 : f32 to vector<16x128xf32>
    %14 = arith.addf %13, %12 : vector<16x128xf32>
    %15 = tpu.reciprocal %14 {approx = true} : vector<16x128xf32> -> vector<16x128xf32>
    %cst_4 = arith.constant 0.000000e+00 : f32
    %16 = vector.broadcast %cst_4 : f32 to vector<16x128xf32>
    %17 = arith.subf %16, %4 : vector<16x128xf32>
    %18 = arith.select %8, %17, %4 : vector<16x128xi1>, vector<16x128xf32>
    %cst_5 = arith.constant 0.000000e+00 : f32
    %19 = vector.broadcast %cst_5 : f32 to vector<16x128xf32>
    %20 = arith.cmpf oge, %18, %19 : vector<16x128xf32>
    %cst_6 = arith.constant 1.000000e+00 : f32
    %21 = vector.broadcast %cst_6 : f32 to vector<16x128xf32>
    %22 = arith.select %20, %21, %12 : vector<16x128xi1>, vector<16x128xf32>
    %23 = arith.mulf %22, %15 : vector<16x128xf32>
    %cst_7 = arith.constant 2.500000e-01 : f32
    %cst_8 = arith.constant 7.500000e-01 : f32
    %24 = vector.broadcast %cst_7 : f32 to vector<16x128xf32>
    %25 = vector.broadcast %cst_8 : f32 to vector<16x128xf32>
    %26 = arith.select %8, %24, %25 : vector<16x128xi1>, vector<16x128xf32>
    %27 = arith.mulf %23, %23 : vector<16x128xf32>
    %28 = arith.mulf %26, %27 : vector<16x128xf32>
    %cst_9 = arith.constant 0.000000e+00 : f32
    %29 = vector.broadcast %cst_9 : f32 to vector<16x128xf32>
    %30 = arith.maximumf %4, %29 : vector<16x128xf32>
    %31 = arith.mulf %4, %6 : vector<16x128xf32>
    %32 = arith.subf %30, %31 : vector<16x128xf32>
    %33 = math.log1p %12 : vector<16x128xf32>
    %34 = arith.addf %32, %33 : vector<16x128xf32>
    %35 = arith.mulf %28, %34 : vector<16x128xf32>
    %36 = vector.shape_cast %35 : vector<16x128xf32> to vector<2x8x128xf32>
    %cst_10 = arith.constant dense<0.000000e+00> : vector<8x128xf32>
    %37 = vector.multi_reduction <add>, %36, %cst_10 [0] : vector<2x8x128xf32> to vector<8x128xf32>
    %38 = arith.addf %0, %37 : vector<8x128xf32>
    %c1_i32 = arith.constant 1 : i32
    %c0_11 = arith.constant 0 : index
    %c0_12 = arith.constant 0 : index
    %39 = vector.load %arg3[%c0_11, %c0_12] : memref<8x128xf32, #tpu.memory_space<vmem>>, vector<8x128xf32>
    tpu.vector_store %arg3[%c0_11, %c0_12], %38 {strides = array<i32>} : memref<8x128xf32, #tpu.memory_space<vmem>>, vector<8x128xf32>,
    return
  }
  func.func @transform_0(%arg0: i32) -> (i32, i32) {
    %c0_i32 = arith.constant 0 : i32
    %c0_i32_0 = arith.constant 0 : i32
    return %arg0, %c0_i32 : i32, i32
  }
  func.func @transform_1(%arg0: i32) -> (i32, i32) {
    %c0_i32 = arith.constant 0 : i32
    %c0_i32_0 = arith.constant 0 : i32
    return %arg0, %c0_i32 : i32, i32
  }
  func.func @transform_2(%arg0: i32) -> (i32, i32) {
    %c0_i32 = arith.constant 0 : i32
    %c0_i32_0 = arith.constant 0 : i32
    return %arg0, %c0_i32 : i32, i32
  }
}

</mosaic_0001>

<bundles_post_ra>
// kernel: tpu_custom_call.1
= control target key start
LH: loop header
LB: loop body
LE: loop exit
PB: predicated region body
PF: predicated region fallthrough
CT: control target
= control target key end

     0   :  { %7 = vsyncpa [#allocation3], 0  ;;  %s272_s0 = inlined_call_operand.hbm [shape: f32[16,128], index: 0, kind: input, shape index: {}]   ;;  %s273_s1 = inlined_call_operand.hbm [shape: f32[16,128], index: 1, kind: input, shape index: {}]   ;;  %s274_s2 = inlined_call_operand.hbm [shape: f32[8,128], index: 2, kind: output, shape index: {}]  }
   0x1   :  { %8 = vsyncpa [#allocation6], 0 }
   0x2   :  { %9 = vsyncpa [#allocation4], 0  ;;  %s211_s9 = smov [#allocation2]   ;;  %s139_s13 = scalar_lea.hbm %s272_s0, 256 }
   0x3   :  { %s15_s10 = sshll.u32 %s211_s9, 4  ;;  %p140_p0 = scmp.ne.s32.totalorder %s272_s0, %s139_s13  ;;  %s16_s10 = int_to_ptr.vmem [resolvable:$true] %s15_s10 }
   0x4   :  { %p143_p1 = scmp.lt.u32.totalorder %s139_s13, %s272_s0 }
   0x6   :  { %p145_p2 = pnand %p143_p1, %p140_p0 }
   0x8   :  { %148 = shalt.err (!%p145_p2)
}
   0x9   :  { %s149_s18 = scalar_lea.vmem %s16_s10, 256  ;;  %p154_p4 = scmp.lt.s32.totalorder %s16_s10, %s16_s10 }
   0xa   :  { %p150_p3 = scmp.ne.s32.totalorder %s16_s10, %s149_s18  ;;  %p155_p5 = scmp.lt.s32.totalorder %s149_s18, %s149_s18 }
   0xc   :  { %p156_p6 = por %p155_p5, %p154_p4 }
   0xe   :  { %p157_p7 = pnand %p156_p6, %p150_p3 }
  0x10   :  { %160 = shalt.err (!%p157_p7)
}
  0x11   :  { %s212_s19 = smov 128   ;;  %s213_s20 = smov 8  }
  0x12   :  { %21 = dma.hbm_to_vmem [thread:$0]  %s272_s0, 256, %s16_s10, [#allocation3], %s212_s19, %s212_s19, %s213_s20  }
  0x13   :  { %s214_s23 = smov [#allocation5]   ;;  %s161_s27 = scalar_lea.hbm %s273_s1, 256 }
  0x14   :  { %s27_s24 = sshll.u32 %s214_s23, 4  ;;  %p162_p8 = scmp.ne.s32.totalorder %s273_s1, %s161_s27  ;;  %s28_s24 = int_to_ptr.vmem [resolvable:$true] %s27_s24 }
  0x15   :  { %p165_p9 = scmp.lt.u32.totalorder %s161_s27, %s273_s1 }
  0x17   :  { %p167_p10 = pnand %p165_p9, %p162_p8 }
  0x19   :  { %170 = shalt.err (!%p167_p10)
}
  0x1a   :  { %s171_s4 = scalar_lea.vmem %s28_s24, 256  ;;  %p176_p12 = scmp.lt.s32.totalorder %s28_s24, %s28_s24 }
  0x1b   :  { %p172_p11 = scmp.ne.s32.totalorder %s28_s24, %s171_s4  ;;  %p177_p13 = scmp.lt.s32.totalorder %s171_s4, %s171_s4 }
  0x1d   :  { %p178_p0 = por %p177_p13, %p176_p12 }
  0x1f   :  { %p179_p1 = pnand %p178_p0, %p172_p11 }
  0x21   :  { %182 = shalt.err (!%p179_p1)
}
  0x22   :  { %33 = dma.hbm_to_vmem [thread:$0]  %s273_s1, 256, %s28_s24, [#allocation6], %s212_s19, %s212_s19, %s213_s20  }
  0x23   :  { %205 = dma.done.wait [#allocation3], 256  }
  0x24   :  { %206 = vsyncadd [#allocation3], 4294967040 }
  0x25   :  { %207 = dma.done.wait [#allocation6], 256  }
  0x26   :  { %208 = vsyncadd [#allocation6], 4294967040  ;;  %v40_v0 = vld [vmem:[#allocation2] sm:$0xff]  ;;  %v41_v1 = vld [vmem:[#allocation2 + $0x8] sm:$0xff]  ;;  %v215_v33 = vmov 0.75   ;;  %s216_s1 = smov [#allocation7]  }
  0x27   :  { %v46_v2 = vand.u32 2147483647, %v40_v0  ;;  %v47_v3 = vand.u32 2147483647, %v41_v1  ;;  %v42_v8 = vld [vmem:[#allocation5] sm:$0xff]  ;;  %v43_v10 = vld [vmem:[#allocation5 + $0x8] sm:$0xff] }
  0x28   :  { %v58_v13 = vsub.f32 0.0, %v40_v0  ;;  %vm44_vm0 = vcmp.eq.f32.partialorder %v42_v8, 1.0  ;;  %v59_v15 = vsub.f32 0.0, %v41_v1  ;;  %vm45_vm1 = vcmp.eq.f32.partialorder %v43_v10, 1.0  ;;  %s111_s6 = sshll.u32 %s216_s1, 4  ;;  %s112_s6 = int_to_ptr.vmem [resolvable:$true] %s111_s6 }
  0x29   :  { %v48_v4 = vsub.f32 0.0, %v46_v2  ;;  %v49_v5 = vsub.f32 0.0, %v47_v3  ;;  %v76_v20 = vmul.f32 %v42_v8, %v40_v0  ;;  %v74_v23 = vmax.f32 %v40_v0, 0.0  ;;  %s183_s7 = scalar_lea.vmem %s112_s6, 128  ;;  %p188_p3 = scmp.lt.s32.totalorder %s112_s6, %s112_s6 }
  0x2a   :  { %v60_v16 = vsel %vm44_vm0, %v58_v13, %v40_v0  ;;  %v61_v17 = vsel %vm45_vm1, %v59_v15, %v41_v1  ;;  %v75_v27 = vmax.f32 %v41_v1, 0.0  ;;  %v77_v28 = vmul.f32 %v43_v10, %v41_v1  ;;  %p184_p2 = scmp.ne.s32.totalorder %s112_s6, %s183_s7  ;;  %p189_p4 = scmp.lt.s32.totalorder %s183_s7, %s183_s7 }
  0x2b   :  { %v50_v6 = vmul.f32 1.442695, %v48_v4  ;;  %v52_v7 = vmul.f32 1.442695, %v49_v5  ;;  %vm62_vm2 = vcmp.ge.f32.partialorder %v60_v16, 0.0  ;;  %vm63_vm3 = vcmp.ge.f32.partialorder %v61_v17, 0.0 }
  0x2c   :  { %v68_v34 = vsel %vm44_vm0, 0.25, %v215_v33  ;;  %v69_v35 = vsel %vm45_vm1, 0.25, %v215_v33  ;;  %v78_v39 = vsub.f32 %v74_v23, %v76_v20  ;;  %v79_v43 = vsub.f32 %v75_v27, %v77_v28  ;;  %p190_p5 = por %p189_p4, %p188_p3 }
  0x2d   :  { %127 = vpow2.f32 %v50_v6 }
  0x2e   :  { %129 = vpow2.f32 %v52_v7  ;;  %p191_p6 = pnand %p190_p5, %p184_p2 }
  0x37   :  { %v128_v9 = vpop.eup %127 }
  0x38   :  { %v130_v11 = vpop.eup %129  ;;  %v54_v12 = vadd.f32 1.0, %v128_v9  ;;  %v83_v18 = vmul.f32 -0.5, %v128_v9  ;;  %v64_v22 = vsel %vm62_vm2, 1.0, %v128_v9  ;;  %v86_v24 = vand.u32 2147483647, %v128_v9 }
  0x39   :  { %v55_v14 = vadd.f32 1.0, %v130_v11  ;;  %v92_v19 = vmul.f32 -0.5, %v130_v11  ;;  %v65_v26 = vsel %vm63_vm3, 1.0, %v130_v11  ;;  %v95_v29 = vand.u32 2147483647, %v130_v11 }
  0x3a   :  { %131 = vrcp.f32 %v54_v12  ;;  %v84_v21 = vadd.f32 1.0, %v83_v18  ;;  %vm87_vm4 = vcmp.lt.f32.partialorder %v86_v24, 0.0004427343 }
  0x3b   :  { %133 = vrcp.f32 %v55_v14  ;;  %v93_v25 = vadd.f32 1.0, %v92_v19  ;;  %vm96_vm5 = vcmp.lt.f32.partialorder %v95_v29, 0.0004427343 }
  0x3c   :  { %135 = vlog2.f32 %v54_v12  ;;  %v85_v36 = vmul.f32 %v128_v9, %v84_v21 }
  0x3d   :  { %137 = vlog2.f32 %v55_v14  ;;  %v94_v40 = vmul.f32 %v130_v11, %v93_v25 }
  0x44   :  { %v132_v30 = vpop.eup %131 }
  0x45   :  { %v134_v31 = vpop.eup %133  ;;  %v66_v32 = vmul.f32 %v132_v30, %v64_v22 }
  0x46   :  { %v136_v37 = vpop.eup %135  ;;  %v67_v38 = vmul.f32 %v134_v31, %v65_v26 }
  0x47   :  { %v138_v41 = vpop.eup %137  ;;  %v70_v42 = vmul.f32 %v66_v32, %v66_v32  ;;  %v82_v44 = vmul.f32 0.6931472, %v136_v37 }
  0x48   :  { %v71_v45 = vmul.f32 %v67_v38, %v67_v38  ;;  %v91_v46 = vmul.f32 0.6931472, %v138_v41 }
  0x49   :  { %v72_v47 = vmul.f32 %v70_v42, %v68_v34  ;;  %v88_v48 = vsel %vm87_vm4, %v85_v36, %v82_v44 }
  0x4a   :  { %v73_v49 = vmul.f32 %v71_v45, %v69_v35  ;;  %v97_v50 = vsel %vm96_vm5, %v94_v40, %v91_v46  ;;  %v98_v51 = vadd.f32 %v88_v48, %v78_v39 }
  0x4b   :  { %v99_v52 = vadd.f32 %v97_v50, %v79_v43 }
  0x4c   :  { %v100_v53 = vmul.f32 %v98_v51, %v72_v47 }
  0x4d   :  { %v101_v54 = vmul.f32 %v99_v52, %v73_v49 }
  0x4f   :  { %v102_v55 = vadd.f32 %v101_v54, %v100_v53 }
  0x51   :  { %104 = vst [vmem:[#allocation7] sm:$0xff] %v102_v55 }
  0x52   :  { %194 = shalt.err (!%p191_p6)
}
  0x53   :  { %s195_s10 = scalar_lea.hbm %s274_s2, 128 }
  0x54   :  { %p196_p7 = scmp.ne.s32.totalorder %s274_s2, %s195_s10  ;;  %p199_p8 = scmp.lt.u32.totalorder %s195_s10, %s274_s2 }
  0x56   :  { %p201_p9 = pnand %p199_p8, %p196_p7 }
  0x58   :  { %204 = shalt.err (!%p201_p9)
}
  0x59   :  { %114 = dma.vmem_to_hbm [thread:$0]  %s112_s6, 128, %s274_s2, [#allocation4]  }
  0x5a   :  { %209 = dma.done.wait [#allocation4], 128  }
  0x5b   :  { %210 = vsyncadd [#allocation4], 4294967168 }
  0x5c   :  { %118 = vsyncpa [#allocation3], 1 }
  0x5d   :  { %119 = vsyncpa [#allocation6], 1 }
  0x5e   :  { %120 = vsyncpa [#allocation4], 1 }

</bundles_post_ra>
